<compile_context>
chip_gen: v7x
topology: tpu7x:2x2x1
jax: 0.10.0
libtpu: 0.0.40
codegen_flags: <defaults>
</compile_context>

<pallas_src>
import functools

import jax
import jax.numpy as jnp
import numpy as np
from jax.experimental import pallas as pl
from jax.experimental.pallas import tpu as pltpu


def _critic_kernel(nsteps_ref, blin_ref, ids_ref, step_ref, emb_proj_ref,
                   whh_ref, wlin_ref, out_ref, xg_sc, h_sc, c_sc, hg_sc, *,
                   hidden_pad, batch_pad):
    """Fused (pad+embed+x-proj) -> LSTM -> time-gather -> Linear(H,1).

    nsteps_ref   : (1,)          int32 SMEM -- max(cur_step)+2 (loop bound)
    blin_ref     : (1,)          f32   SMEM -- critic linear bias
    ids_ref      : (T2*Bp, 1)    int32 VMEM -- padded token ids, row = t*Bp+b
    step_ref     : (Bp, 1)       int32 VMEM -- cur_step (clamped, batch-padded)
    emb_proj_ref : (128, 4Hp)    f32   VMEM -- emb @ W_ih^T + b, gate order ifog->ifog'
    whh_ref      : (Hp, 4Hp)     bf16  VMEM -- W_hh^T, gate-reordered, zero-padded
    wlin_ref     : (1, Hp)       f32   VMEM -- critic linear weight, padded
    out_ref      : (Bp, 1)       f32   VMEM -- critic value
    xg_sc        : (T2*Bp, 4Hp)  f32 scratch -- hoisted input projections
    h_sc         : (Bp, Hp)      bf16 scratch -- recurrent h (matmul operand)
    c_sc, hg_sc  : (Bp, Hp)      f32 scratch -- cell state / gathered h
    """
    Hp = hidden_pad
    Bp = batch_pad

    # ---- one-hot MXU gather of all (t, b) input projections ---------------
    n_rows = xg_sc.shape[0]                       # T2 * Bp
    n_vocab = emb_proj_ref.shape[0]               # 128 (padded)
    lane = jax.lax.broadcasted_iota(jnp.int32, (n_rows, n_vocab), 1)
    one_hot = (ids_ref[...] == lane).astype(jnp.float32)
    xg_sc[...] = jnp.dot(one_hot, emb_proj_ref[...],
                         preferred_element_type=jnp.float32)

    h_sc[...] = jnp.zeros_like(h_sc)
    c_sc[...] = jnp.zeros_like(c_sc)
    hg_sc[...] = jnp.zeros_like(hg_sc)
    tgt = step_ref[...] + 1                       # (Bp, 1): gather position

    # ---- serial LSTM recurrence: one bf16 matmul per step ------------------
    @pl.loop(0, nsteps_ref[0])
    def _step(t):
        row = pl.multiple_of(t * Bp, Bp)
        x_t = xg_sc[pl.ds(row, Bp), :]                        # (Bp, 4Hp) f32
        gates = x_t + jnp.dot(h_sc[...], whh_ref[...],
                              preferred_element_type=jnp.float32)
        # Gate order (i, f, o, g): one sigmoid launch + one tanh launch.
        sig = jax.nn.sigmoid(gates[:, :3 * Hp])
        i_g = sig[:, 0 * Hp:1 * Hp]
        f_g = sig[:, 1 * Hp:2 * Hp]
        o_g = sig[:, 2 * Hp:3 * Hp]
        g_g = jnp.tanh(gates[:, 3 * Hp:4 * Hp])
        c_new = f_g * c_sc[...] + i_g * g_g
        h_new = o_g * jnp.tanh(c_new)
        c_sc[...] = c_new
        h_sc[...] = h_new.astype(h_sc.dtype)                  # bf16 operand
        # Per-batch time-gather into a full-width VMEM scratch (cheap vselect).
        hg_sc[...] = jnp.where(tgt == t, h_new, hg_sc[...])

    # ---- critic head: Linear(H, 1); padded lanes of wlin are zero ----------
    val = jnp.sum(hg_sc[...] * wlin_ref[...], axis=1, keepdims=True)  # (Bp, 1)
    out_ref[...] = val + blin_ref[0]


def critic_forward(action_history, cur_step, params, hidden_dim):
    """JAX/Pallas equivalent of Critic.forward -> (B,) values."""
    emb = params["embedding"].astype(jnp.float32)             # (A+1, H)
    w_ih = params["w_ih"].astype(jnp.float32)                 # (4H, H)
    w_hh = params["w_hh"].astype(jnp.float32)                 # (4H, H)
    bias = (params["b_ih"] + params["b_hh"]).astype(jnp.float32)   # (4H,)
    w_lin = params["w_lin"].astype(jnp.float32)               # (1, H)
    b_lin = params["b_lin"].astype(jnp.float32)               # (1,)

    B, T = action_history.shape
    H = hidden_dim
    Hp = 128                              # pad each gate block to 128 lanes
    Bp = max(8, int(np.ceil(B / 8)) * 8)  # pad batch to a full sublane tile
    T2 = T + 2
    A1 = emb.shape[0]
    Ap = 128                              # pad vocab to a full lane tile

    gate_order = jnp.array([0, 1, 3, 2])  # torch (i,f,g,o) -> (i,f,o,g)

    # Fold embedding lookup + x @ W_ih^T + bias into one small table; reorder
    # gate blocks and pad each from H to Hp columns (pad columns exact zeros).
    emb_proj = emb @ w_ih.T + bias[None, :]                   # (A+1, 4H)
    emb_proj = emb_proj.reshape(A1, 4, H)[:, gate_order, :]
    emb_proj = jnp.pad(emb_proj, ((0, Ap - A1), (0, 0), (0, Hp - H)))
    emb_proj = emb_proj.reshape(Ap, 4 * Hp)                   # (128, 4Hp) f32

    whh = w_hh.T.reshape(H, 4, H)[:, gate_order, :]           # (H, 4, H)
    whh = jnp.pad(whh, ((0, Hp - H), (0, 0), (0, Hp - H)))
    whh = whh.reshape(Hp, 4 * Hp).astype(jnp.bfloat16)        # (Hp, 4Hp) bf16

    wlin = jnp.pad(w_lin, ((0, 0), (0, Hp - H)))              # (1, Hp)
    blin = b_lin.reshape(1)                                   # (1,) SMEM scalar

    ah = action_history.astype(jnp.int32)                     # (B, T)
    # seq[b, 0] = seq[b, T+1] = 0 (pad token); seq[b, t] = action[b, t-1] + 1.
    seq = jnp.pad(ah + 1, ((0, Bp - B), (1, 1)))              # (Bp, T2)
    ids = seq.T.reshape(T2 * Bp, 1)                           # row = t*Bp + b

    step_cl = jnp.clip(cur_step.astype(jnp.int32), 0, T)      # guard range
    step_idx = jnp.pad(step_cl, (0, Bp - B)).reshape(Bp, 1)
    nsteps = (jnp.max(step_cl) + 2).reshape(1).astype(jnp.int32)

    kernel = functools.partial(_critic_kernel, hidden_pad=Hp, batch_pad=Bp)
    smem = pl.BlockSpec(memory_space=pltpu.MemorySpace.SMEM)
    vmem = pl.BlockSpec(memory_space=pltpu.MemorySpace.VMEM)
    out = pl.pallas_call(
        kernel,
        out_shape=jax.ShapeDtypeStruct((Bp, 1), jnp.float32),
        in_specs=[smem, smem, vmem, vmem, vmem, vmem, vmem],
        out_specs=vmem,
        scratch_shapes=[
            pltpu.VMEM((T2 * Bp, 4 * Hp), jnp.float32),   # hoisted x-projections
            pltpu.VMEM((Bp, Hp), jnp.bfloat16),           # h (recurrent operand)
            pltpu.VMEM((Bp, Hp), jnp.float32),            # c
            pltpu.VMEM((Bp, Hp), jnp.float32),            # gathered h
        ],
    )(nsteps, blin, ids, step_idx, emb_proj, whh, wlin)
    return out[:B, 0]                                         # (B,)


def _reference_forward(action_history, cur_step, params, hidden_dim):
    """Pure-JAX f32 reference replicating torch semantics of Critic.forward."""
    H = hidden_dim
    seq = jnp.pad(action_history.astype(jnp.int32) + 1, ((0, 0), (1, 1)))
    x = params["embedding"][seq]                              # (B, T2, H)
    B, T2, _ = x.shape
    w_ih_t = params["w_ih"].T
    w_hh_t = params["w_hh"].T
    bias = params["b_ih"] + params["b_hh"]

    def step(carry, x_t):
        h, c = carry
        gates = x_t @ w_ih_t + h @ w_hh_t + bias
        i = jax.nn.sigmoid(gates[:, 0:H])
        f = jax.nn.sigmoid(gates[:, H:2 * H])
        g = jnp.tanh(gates[:, 2 * H:3 * H])
        o = jax.nn.sigmoid(gates[:, 3 * H:4 * H])
        c = f * c + i * g
        h = o * jnp.tanh(c)
        return (h, c), h

    h0 = jnp.zeros((B, H), jnp.float32)
    (_, _), hs = jax.lax.scan(step, (h0, h0), jnp.transpose(x, (1, 0, 2)))
    feature = jnp.transpose(hs, (1, 0, 2))                    # (B, T2, H)
    idx = cur_step.astype(jnp.int32) + 1
    feat = feature[jnp.arange(B), idx]                        # (B, H)
    return (feat @ params["w_lin"].T + params["b_lin"])[:, 0]  # (B,)


if __name__ == "__main__":
    # Module config (synthetic, deterministic)
    action_dim = 4          # obs_space['action_history'].nvec[0]
    hidden_dim = 64
    B, T = 2, 8

    key = jax.random.PRNGKey(0)
    (k_emb, k_wih, k_whh, k_bih, k_bhh,
     k_wl, k_bl, k_hist, k_step) = jax.random.split(key, 9)

    scale = 1.0 / np.sqrt(hidden_dim)
    params = {
        "embedding": jax.random.normal(k_emb, (action_dim + 1, hidden_dim),
                                       jnp.float32),
        "w_ih": jax.random.uniform(k_wih, (4 * hidden_dim, hidden_dim),
                                   jnp.float32, -scale, scale),
        "w_hh": jax.random.uniform(k_whh, (4 * hidden_dim, hidden_dim),
                                   jnp.float32, -scale, scale),
        "b_ih": jax.random.uniform(k_bih, (4 * hidden_dim,),
                                   jnp.float32, -scale, scale),
        "b_hh": jax.random.uniform(k_bhh, (4 * hidden_dim,),
                                   jnp.float32, -scale, scale),
        "w_lin": jax.random.uniform(k_wl, (1, hidden_dim),
                                    jnp.float32, -scale, scale),
        "b_lin": jax.random.uniform(k_bl, (1,),
                                    jnp.float32, -scale, scale),
    }

    # Observation: action_history (B, T) ints in [0, action_dim), cur_step (B,)
    action_history = jax.random.randint(k_hist, (B, T), 0, action_dim,
                                        dtype=jnp.int32)
    cur_step = jax.random.randint(k_step, (B,), 0, T, dtype=jnp.int32)

    fwd = jax.jit(functools.partial(critic_forward, hidden_dim=hidden_dim))
    out = fwd(action_history, cur_step, params)
    out = jax.block_until_ready(out)

    ref = _reference_forward(action_history, cur_step, params, hidden_dim)
    # bf16 recurrent operands + bf16-pass one-hot gather -> loose-ish tolerance.
    np.testing.assert_allclose(np.asarray(out), np.asarray(ref),
                               rtol=2e-2, atol=2e-2)
    print("KERNEL_OK")
</pallas_src>

<mosaic_0001>
module attributes {stable_mosaic.version = 11 : i64} {
  func.func @_critic_kernel(%arg0: memref<1xi32, #tpu.memory_space<smem>>, %arg1: memref<1xf32, #tpu.memory_space<smem>>, %arg2: memref<80x1xi32, #tpu.memory_space<vmem>>, %arg3: memref<8x1xi32, #tpu.memory_space<vmem>>, %arg4: memref<128x512xf32, #tpu.memory_space<vmem>>, %arg5: memref<128x512xbf16, #tpu.memory_space<vmem>>, %arg6: memref<1x128xf32, #tpu.memory_space<vmem>>, %arg7: memref<8x1xf32, #tpu.memory_space<vmem>>, %arg8: memref<80x512xf32, #tpu.memory_space<vmem>>, %arg9: memref<8x128xbf16, #tpu.memory_space<vmem>>, %arg10: memref<8x128xf32, #tpu.memory_space<vmem>>, %arg11: memref<8x128xf32, #tpu.memory_space<vmem>>) attributes {dimension_semantics = [], scalar_prefetch = 0 : i64, scratch_operands = 4 : i64, tpu.core_type = #tpu.core_type<tc>} {
    %0 = tpu.iota {dimensions = array<i32: 1>} : vector<80x128xi32>
    %c0 = arith.constant 0 : index
    %c0_0 = arith.constant 0 : index
    %1 = vector.load %arg2[%c0, %c0_0] : memref<80x1xi32, #tpu.memory_space<vmem>>, vector<80x1xi32>
    %2 = vector.broadcast %1 : vector<80x1xi32> to vector<80x128xi32>
    %3 = arith.cmpi eq, %2, %0 : vector<80x128xi32>
    %4 = arith.extui %3 : vector<80x128xi1> to vector<80x128xi32>
    %5 = arith.sitofp %4 : vector<80x128xi32> to vector<80x128xf32>
    %c0_1 = arith.constant 0 : index
    %c0_2 = arith.constant 0 : index
    %6 = vector.load %arg4[%c0_1, %c0_2] : memref<128x512xf32, #tpu.memory_space<vmem>>, vector<128x512xf32>
    %cst = arith.constant dense<0.000000e+00> : vector<80x512xf32>
    %7 = tpu.matmul %5, %6, %cst {dimension_numbers = #tpu.dot_dimension_numbers<[1], [0], [0], [1], [0, 0, 1, 1], [], []>} : vector<80x128xf32>, vector<128x512xf32>, vector<80x512xf32> -> vector<80x512xf32>
    %c0_3 = arith.constant 0 : index
    %c0_4 = arith.constant 0 : index
    %8 = vector.load %arg8[%c0_3, %c0_4] : memref<80x512xf32, #tpu.memory_space<vmem>>, vector<80x512xf32>
    tpu.vector_store %arg8[%c0_3, %c0_4], %7 {strides = array<i32>} : memref<80x512xf32, #tpu.memory_space<vmem>>, vector<80x512xf32>,
    %cst_5 = arith.constant 0.000000e+00 : bf16
    %9 = vector.broadcast %cst_5 : bf16 to vector<8x128xbf16>
    %c0_6 = arith.constant 0 : index
    %c0_7 = arith.constant 0 : index
    %10 = vector.load %arg9[%c0_6, %c0_7] : memref<8x128xbf16, #tpu.memory_space<vmem>>, vector<8x128xbf16>
    tpu.vector_store %arg9[%c0_6, %c0_7], %9 {strides = array<i32>} : memref<8x128xbf16, #tpu.memory_space<vmem>>, vector<8x128xbf16>,
    %cst_8 = arith.constant 0.000000e+00 : f32
    %11 = vector.broadcast %cst_8 : f32 to vector<8x128xf32>
    %c0_9 = arith.constant 0 : index
    %c0_10 = arith.constant 0 : index
    %12 = vector.load %arg10[%c0_9, %c0_10] : memref<8x128xf32, #tpu.memory_space<vmem>>, vector<8x128xf32>
    tpu.vector_store %arg10[%c0_9, %c0_10], %11 {strides = array<i32>} : memref<8x128xf32, #tpu.memory_space<vmem>>, vector<8x128xf32>,
    %cst_11 = arith.constant 0.000000e+00 : f32
    %13 = vector.broadcast %cst_11 : f32 to vector<8x128xf32>
    %c0_12 = arith.constant 0 : index
    %c0_13 = arith.constant 0 : index
    %14 = vector.load %arg11[%c0_12, %c0_13] : memref<8x128xf32, #tpu.memory_space<vmem>>, vector<8x128xf32>
    tpu.vector_store %arg11[%c0_12, %c0_13], %13 {strides = array<i32>} : memref<8x128xf32, #tpu.memory_space<vmem>>, vector<8x128xf32>,
    %c0_14 = arith.constant 0 : index
    %c0_15 = arith.constant 0 : index
    %15 = vector.load %arg3[%c0_14, %c0_15] : memref<8x1xi32, #tpu.memory_space<vmem>>, vector<8x1xi32>
    %c1_i32 = arith.constant 1 : i32
    %16 = vector.broadcast %c1_i32 : i32 to vector<8x1xi32>
    %17 = arith.addi %15, %16 : vector<8x1xi32>
    %c0_16 = arith.constant 0 : index
    %18 = memref.load %arg0[%c0_16] : memref<1xi32, #tpu.memory_space<smem>>
    %c0_i32 = arith.constant 0 : i32
    %19 = arith.subi %18, %c0_i32 : i32
    %c1_i32_17 = arith.constant 1 : i32
    %c1_i32_18 = arith.constant 1 : i32
    %20 = arith.subi %c1_i32_17, %c1_i32_18 : i32
    %21 = arith.addi %19, %20 : i32
    %c1_i32_19 = arith.constant 1 : i32
    %22 = arith.divsi %21, %c1_i32_19 : i32
    %c1_i32_20 = arith.constant 1 : i32
    %c0_i32_21 = arith.constant 0 : i32
    %c0_i32_22 = arith.constant 0 : i32
    %23 = arith.subi %22, %c0_i32_22 : i32
    %24 = arith.addi %c0_i32_22, %23 : i32
    %c1_i32_23 = arith.constant 1 : i32
    scf.for %arg12 = %c0_i32_22 to %24 step %c1_i32_23  : i32 {
      %35 = arith.muli %arg12, %c1_i32_20 : i32
      %36 = arith.addi %c0_i32_21, %35 : i32
      %c8_i32 = arith.constant 8 : i32
      %37 = arith.muli %36, %c8_i32 : i32
      %38 = tpu.assume_multiple %37, 8 : i32
      %39 = arith.index_cast %38 : i32 to index
      %c0_32 = arith.constant 0 : index
      %40 = vector.load %arg8[%39, %c0_32] : memref<80x512xf32, #tpu.memory_space<vmem>>, vector<8x512xf32>
      %c0_33 = arith.constant 0 : index
      %c0_34 = arith.constant 0 : index
      %41 = vector.load %arg9[%c0_33, %c0_34] : memref<8x128xbf16, #tpu.memory_space<vmem>>, vector<8x128xbf16>
      %c0_35 = arith.constant 0 : index
      %c0_36 = arith.constant 0 : index
      %42 = vector.load %arg5[%c0_35, %c0_36] : memref<128x512xbf16, #tpu.memory_space<vmem>>, vector<128x512xbf16>
      %cst_37 = arith.constant dense<0.000000e+00> : vector<8x512xf32>
      %43 = tpu.matmul %41, %42, %cst_37 {dimension_numbers = #tpu.dot_dimension_numbers<[1], [0], [0], [1], [0, 0, 1, 1], [], []>} : vector<8x128xbf16>, vector<128x512xbf16>, vector<8x512xf32> -> vector<8x512xf32>
      %44 = arith.addf %40, %43 : vector<8x512xf32>
      %45 = vector.extract_strided_slice %44 {offsets = [0, 0], sizes = [8, 384], strides = [1, 1]} : vector<8x512xf32> to vector<8x384xf32>
      %46 = arith.negf %45 : vector<8x384xf32>
      %47 = math.exp %46 : vector<8x384xf32>
      %cst_38 = arith.constant 1.000000e+00 : f32
      %48 = vector.broadcast %cst_38 : f32 to vector<8x384xf32>
      %49 = arith.addf %48, %47 : vector<8x384xf32>
      %50 = arith.divf %48, %49 : vector<8x384xf32>
      %51 = vector.extract_strided_slice %50 {offsets = [0, 0], sizes = [8, 128], strides = [1, 1]} : vector<8x384xf32> to vector<8x128xf32>
      %52 = vector.extract_strided_slice %50 {offsets = [0, 128], sizes = [8, 128], strides = [1, 1]} : vector<8x384xf32> to vector<8x128xf32>
      %53 = vector.extract_strided_slice %50 {offsets = [0, 256], sizes = [8, 128], strides = [1, 1]} : vector<8x384xf32> to vector<8x128xf32>
      %54 = vector.extract_strided_slice %44 {offsets = [0, 384], sizes = [8, 128], strides = [1, 1]} : vector<8x512xf32> to vector<8x128xf32>
      %55 = math.tanh %54 : vector<8x128xf32>
      %c0_39 = arith.constant 0 : index
      %c0_40 = arith.constant 0 : index
      %56 = vector.load %arg10[%c0_39, %c0_40] : memref<8x128xf32, #tpu.memory_space<vmem>>, vector<8x128xf32>
      %57 = arith.mulf %52, %56 : vector<8x128xf32>
      %58 = arith.mulf %51, %55 : vector<8x128xf32>
      %59 = arith.addf %57, %58 : vector<8x128xf32>
      %60 = math.tanh %59 : vector<8x128xf32>
      %61 = arith.mulf %53, %60 : vector<8x128xf32>
      %c0_41 = arith.constant 0 : index
      %c0_42 = arith.constant 0 : index
      %62 = vector.load %arg10[%c0_41, %c0_42] : memref<8x128xf32, #tpu.memory_space<vmem>>, vector<8x128xf32>
      tpu.vector_store %arg10[%c0_41, %c0_42], %59 {strides = array<i32>} : memref<8x128xf32, #tpu.memory_space<vmem>>, vector<8x128xf32>,
      %63 = arith.truncf %61 : vector<8x128xf32> to vector<8x128xbf16>
      %c0_43 = arith.constant 0 : index
      %c0_44 = arith.constant 0 : index
      %64 = vector.load %arg9[%c0_43, %c0_44] : memref<8x128xbf16, #tpu.memory_space<vmem>>, vector<8x128xbf16>
      tpu.vector_store %arg9[%c0_43, %c0_44], %63 {strides = array<i32>} : memref<8x128xbf16, #tpu.memory_space<vmem>>, vector<8x128xbf16>,
      %65 = vector.broadcast %36 : i32 to vector<8x1xi32>
      %66 = arith.cmpi eq, %17, %65 : vector<8x1xi32>
      %c0_45 = arith.constant 0 : index
      %c0_46 = arith.constant 0 : index
      %67 = vector.load %arg11[%c0_45, %c0_46] : memref<8x128xf32, #tpu.memory_space<vmem>>, vector<8x128xf32>
      %68 = vector.shape_cast %66 : vector<8x1xi1> to vector<8x1xi1>
      %69 = vector.broadcast %68 : vector<8x1xi1> to vector<8x128xi1>
      %70 = arith.select %69, %61, %67 : vector<8x128xi1>, vector<8x128xf32>
      %c0_47 = arith.constant 0 : index
      %c0_48 = arith.constant 0 : index
      %71 = vector.load %arg11[%c0_47, %c0_48] : memref<8x128xf32, #tpu.memory_space<vmem>>, vector<8x128xf32>
      tpu.vector_store %arg11[%c0_47, %c0_48], %70 {strides = array<i32>} : memref<8x128xf32, #tpu.memory_space<vmem>>, vector<8x128xf32>,
    }
    %c0_24 = arith.constant 0 : index
    %c0_25 = arith.constant 0 : index
    %25 = vector.load %arg11[%c0_24, %c0_25] : memref<8x128xf32, #tpu.memory_space<vmem>>, vector<8x128xf32>
    %c0_26 = arith.constant 0 : index
    %c0_27 = arith.constant 0 : index
    %26 = vector.load %arg6[%c0_26, %c0_27] : memref<1x128xf32, #tpu.memory_space<vmem>>, vector<1x128xf32>
    %27 = vector.broadcast %26 : vector<1x128xf32> to vector<8x128xf32>
    %28 = arith.mulf %25, %27 : vector<8x128xf32>
    %cst_28 = arith.constant dense<0.000000e+00> : vector<8xf32>
    %29 = vector.multi_reduction <add>, %28, %cst_28 [1] : vector<8x128xf32> to vector<8xf32>
    %30 = vector.shape_cast %29 : vector<8xf32> to vector<8x1xf32>
    %c0_29 = arith.constant 0 : index
    %31 = memref.load %arg1[%c0_29] : memref<1xf32, #tpu.memory_space<smem>>
    %32 = vector.broadcast %31 : f32 to vector<8x1xf32>
    %33 = arith.addf %30, %32 : vector<8x1xf32>
    %c0_30 = arith.constant 0 : index
    %c0_31 = arith.constant 0 : index
    %34 = vector.load %arg7[%c0_30, %c0_31] : memref<8x1xf32, #tpu.memory_space<vmem>>, vector<8x1xf32>
    tpu.vector_store %arg7[%c0_30, %c0_31], %33 {strides = array<i32>} : memref<8x1xf32, #tpu.memory_space<vmem>>, vector<8x1xf32>,
    return
  }
}

</mosaic_0001>

<bundles_post_ra>
// kernel: critic_forward.1
= control target key start
LH: loop header
LB: loop body
LE: loop exit
PB: predicated region body
PF: predicated region fallthrough
CT: control target
= control target key end

     0   :  { %v1043_v0 = vmov 0   ;;  %v1044_v3 = vmov 0.0   ;;  %s1458_s2 = inlined_call_operand.vmem [shape: s32[80,1], index: 2, kind: input, shape index: {}]   ;;  %s1459_s0 = inlined_call_operand.<no memory space> [shape: s32[1], index: 0, kind: input, shape index: {}]   ;;  %s1460_s1 = inlined_call_operand.<no memory space> [shape: f32[1], index: 1, kind: input, shape index: {}]   ;;  %s1461_s5 = inlined_call_operand.vmem [shape: bf16[128,512], index: 5, kind: input, shape index: {}]   ;;  %s1462_s6 = inlined_call_operand.vmem [shape: f32[1,128], index: 6, kind: input, shape index: {}]   ;;  %s1463_s7 = inlined_call_operand.vmem [shape: f32[8,1], index: 7, kind: output, shape index: {}]   ;;  %s1464_s4 = inlined_call_operand.vmem [shape: f32[128,512], index: 4, kind: input, shape index: {}]   ;;  %s1465_s3 = inlined_call_operand.vmem [shape: s32[8,1], index: 3, kind: input, shape index: {}]  }
   0x1   :  { %969 = vset.pattern.permute.xlu1 %v1043_v0  ;;  %455 = vst [vmem:[#allocation3] sm:$0xf] %v1043_v0  ;;  %968 = vset.pattern.permute.xlu0 %v1043_v0  ;;  %v33_v1 = vld [vmem:[%s1458_s2 + $0x10] sm:$0xff]  ;;  %v31_v2 = vld [vmem:[%s1458_s2] sm:$0xff]  ;;  %13 = sst [smem:[#allocation7]] %s1460_s1  ;;  %456 = vst [vmem:[#allocation4] sm:$0xff] %v1044_v3 }
   0x2   :  { %48 = vperm.xlu1 %969, %v33_v1   ;;  %42 = vperm.xlu0 %968, %v31_v2   ;;  %457 = vst [vmem:[#allocation5] sm:$0xff] %v1044_v3  ;;  %v34_v4 = vld [vmem:[%s1458_s2 + $0x18] sm:$0xff]  ;;  %v32_v5 = vld [vmem:[%s1458_s2 + $0x8] sm:$0xff]  ;;  %v35_v9 = vld [vmem:[%s1458_s2 + $0x20] sm:$0xff]  ;;  %p851_p0 = scmp.le.s32.totalorder %s1459_s0, 0 }
   0x3   :  { %229 = vmatprep.mubr.f32.mxu0 %v1044_v3  ;;  %354 = vmatprep.mubr.f32.mxu1 %v1044_v3  ;;  %v102_v6 = vld [vmem:[%s1464_s4 + $0x8] sm:$0xff]  ;;  %v104_v11 = vld [vmem:[%s1464_s4 + $0x18] sm:$0xff]  ;;  %v101_v13 = vld [vmem:[%s1464_s4] sm:$0xff]  ;;  %s1342_s29 = smov (!%p851_p0), 0  }
   0x4   :  { %v106_v7 = vld [vmem:[%s1464_s4 + $0x28] sm:$0xff]  ;;  %v108_v12 = vld [vmem:[%s1464_s4 + $0x38] sm:$0xff]  ;;  %v105_v15 = vld [vmem:[%s1464_s4 + $0x20] sm:$0xff] }
   0x5   :  { %v36_v8 = vld [vmem:[%s1458_s2 + $0x28] sm:$0xff]  ;;  %v892_v10 = vpack.c.bf16 %v106_v7, %v102_v6  ;;  %v924_v14 = vpack.c.bf16 %v108_v12, %v104_v11  ;;  %v103_v16 = vld [vmem:[%s1464_s4 + $0x10] sm:$0xff]  ;;  %v894_v18 = vpack.c.bf16 %v105_v15, %v101_v13  ;;  %v112_v22 = vld [vmem:[%s1464_s4 + $0x58] sm:$0xff] }
   0x6   :  { %51 = vperm.xlu1 %969, %v34_v4   ;;  %45 = vperm.xlu0 %968, %v32_v5   ;;  %v107_v17 = vld [vmem:[%s1464_s4 + $0x30] sm:$0xff]  ;;  %v110_v20 = vld [vmem:[%s1464_s4 + $0x48] sm:$0xff]  ;;  %v116_v24 = vld [vmem:[%s1464_s4 + $0x78] sm:$0xff] }
   0x7   :  { %893 = vmatprep.subr.bf16.mxu0 %v892_v10  ;;  %v926_v19 = vpack.c.bf16 %v107_v17, %v103_v16  ;;  %v114_v21 = vld [vmem:[%s1464_s4 + $0x68] sm:$0xff]  ;;  %925 = vmatprep.subr.bf16.mxu1 %v924_v14  ;;  %v109_v25 = vld [vmem:[%s1464_s4 + $0x40] sm:$0xff]  ;;  %v38_v27 = vld [vmem:[%s1458_s2 + $0x38] sm:$0xff]  ;;  %v928_v29 = vpack.c.bf16 %v116_v24, %v112_v22 }
   0x8   :  { %v896_v23 = vpack.c.bf16 %v114_v21, %v110_v20  ;;  %v113_v26 = vld [vmem:[%s1464_s4 + $0x60] sm:$0xff]  ;;  %v37_v28 = vld [vmem:[%s1458_s2 + $0x30] sm:$0xff]  ;;  %895 = vmatpush1.bf16.msra.mxu0 %v894_v18  ;;  %v118_v33 = vld [vmem:[%s1464_s4 + $0x88] sm:$0xff] }
   0x9   :  { %927 = vmatpush1.bf16.msra.mxu1 %v926_v19  ;;  %v898_v30 = vpack.c.bf16 %v113_v26, %v109_v25  ;;  %v111_v31 = vld [vmem:[%s1464_s4 + $0x50] sm:$0xff]  ;;  %v122_v35 = vld [vmem:[%s1464_s4 + $0xa8] sm:$0xff]  ;;  %v120_v36 = vld [vmem:[%s1464_s4 + $0x98] sm:$0xff] }
   0xa   :  { %v115_v32 = vld [vmem:[%s1464_s4 + $0x70] sm:$0xff]  ;;  %57 = vperm.xlu1 %969, %v36_v8   ;;  %54 = vperm.xlu0 %968, %v35_v9   ;;  %v124_v37 = vld [vmem:[%s1464_s4 + $0xb8] sm:$0xff]  ;;  %v900_v38 = vpack.c.bf16 %v122_v35, %v118_v33  ;;  %v117_v40 = vld [vmem:[%s1464_s4 + $0x80] sm:$0xff] }
   0xb   :  { %v930_v34 = vpack.c.bf16 %v115_v32, %v111_v31  ;;  %897 = vmatprep.subr.bf16.mxu0 %v896_v23  ;;  %929 = vmatprep.subr.bf16.mxu1 %v928_v29  ;;  %v932_v39 = vpack.c.bf16 %v124_v37, %v120_v36  ;;  %v121_v41 = vld [vmem:[%s1464_s4 + $0xa0] sm:$0xff]  ;;  %v119_v42 = vld [vmem:[%s1464_s4 + $0x90] sm:$0xff]  ;;  %v126_v44 = vld [vmem:[%s1464_s4 + $0xc8] sm:$0xff] }
   0xc   :  { %v123_v43 = vld [vmem:[%s1464_s4 + $0xb0] sm:$0xff]  ;;  %v130_v45 = vld [vmem:[%s1464_s4 + $0xe8] sm:$0xff]  ;;  %v39_v47 = vld [vmem:[%s1458_s2 + $0x40] sm:$0xff]  ;;  %899 = vmatpush1.bf16.msra.mxu0 %v898_v30  ;;  %v902_v48 = vpack.c.bf16 %v121_v41, %v117_v40 }
   0xd   :  { %v40_v46 = vld [vmem:[%s1458_s2 + $0x48] sm:$0xff]  ;;  %931 = vmatpush1.bf16.msra.mxu1 %v930_v34  ;;  %v934_v49 = vpack.c.bf16 %v123_v43, %v119_v42  ;;  %v128_v50 = vld [vmem:[%s1464_s4 + $0xd8] sm:$0xff]  ;;  %v125_v52 = vld [vmem:[%s1464_s4 + $0xc0] sm:$0xff]  ;;  %901 = vmatprep.subr.bf16.mxu0 %v900_v38  ;;  %v904_v56 = vpack.c.bf16 %v130_v45, %v126_v44  ;;  %v29_v45 = vlaneseq }
   0xe   :  { %v132_v51 = vld [vmem:[%s1464_s4 + $0xf8] sm:$0xff]  ;;  %63 = vperm.xlu1 %969, %v38_v27   ;;  %60 = vperm.xlu0 %968, %v37_v28   ;;  %v129_v53 = vld [vmem:[%s1464_s4 + $0xe0] sm:$0xff]  ;;  %v127_v54 = vld [vmem:[%s1464_s4 + $0xd0] sm:$0xff] }
   0xf   :  { %v131_v55 = vld [vmem:[%s1464_s4 + $0xf0] sm:$0xff]  ;;  %933 = vmatprep.subr.bf16.mxu1 %v932_v39  ;;  %v936_v57 = vpack.c.bf16 %v132_v51, %v128_v50  ;;  %v134_v58 = vld [vmem:[%s1464_s4 + $0x108] sm:$0xff]  ;;  %v136_v60 = vld [vmem:[%s1464_s4 + $0x118] sm:$0xff]  ;;  %v906_v62 = vpack.c.bf16 %v129_v53, %v125_v52 }
  0x10   :  { %v138_v59 = vld [vmem:[%s1464_s4 + $0x128] sm:$0xff]  ;;  %v140_v61 = vld [vmem:[%s1464_s4 + $0x138] sm:$0xff]  ;;  %903 = vmatpush1.bf16.msra.mxu0 %v902_v48  ;;  %v938_v63 = vpack.c.bf16 %v131_v55, %v127_v54  ;;  %v133_v0 = vld [vmem:[%s1464_s4 + $0x100] sm:$0xff]  ;;  %v1045_v48 = vmov 1.0  }
  0x11   :  { %935 = vmatpush1.bf16.msra.mxu1 %v934_v49  ;;  %v137_v1 = vld [vmem:[%s1464_s4 + $0x120] sm:$0xff]  ;;  %v908_v2 = vpack.c.bf16 %v138_v59, %v134_v58  ;;  %v940_v4 = vpack.c.bf16 %v140_v61, %v136_v60  ;;  %v135_v5 = vld [vmem:[%s1464_s4 + $0x110] sm:$0xff]  ;;  %v142_v7 = vld [vmem:[%s1464_s4 + $0x148] sm:$0xff]  ;;  %905 = vmatprep.subr.bf16.mxu0 %v904_v56 }
  0x12   :  { %69 = vperm.xlu1 %969, %v40_v46   ;;  %66 = vperm.xlu0 %968, %v39_v47   ;;  %v139_v6 = vld [vmem:[%s1464_s4 + $0x130] sm:$0xff]  ;;  %v146_v8 = vld [vmem:[%s1464_s4 + $0x168] sm:$0xff]  ;;  %v144_v9 = vld [vmem:[%s1464_s4 + $0x158] sm:$0xff]  ;;  %v910_v11 = vpack.c.bf16 %v137_v1, %v133_v0  ;;  %v30_v46 = vand.u32 127, %v29_v45 }
  0x13   :  { %937 = vmatprep.subr.bf16.mxu1 %v936_v57  ;;  %v148_v10 = vld [vmem:[%s1464_s4 + $0x178] sm:$0xff]  ;;  %v942_v12 = vpack.c.bf16 %v139_v6, %v135_v5  ;;  %v141_v13 = vld [vmem:[%s1464_s4 + $0x140] sm:$0xff]  ;;  %v912_v15 = vpack.c.bf16 %v146_v8, %v142_v7  ;;  %v143_v17 = vld [vmem:[%s1464_s4 + $0x150] sm:$0xff] }
  0x14   :  { %907 = vmatpush1.bf16.msra.mxu0 %v906_v62  ;;  %v145_v14 = vld [vmem:[%s1464_s4 + $0x160] sm:$0xff]  ;;  %v944_v16 = vpack.c.bf16 %v148_v10, %v144_v9  ;;  %v147_v18 = vld [vmem:[%s1464_s4 + $0x170] sm:$0xff]  ;;  %v150_v19 = vld [vmem:[%s1464_s4 + $0x188] sm:$0xff] }
  0x15   :  { %939 = vmatpush1.bf16.msra.mxu1 %v938_v63  ;;  %909 = vmatprep.subr.bf16.mxu0 %v908_v2  ;;  %v154_v20 = vld [vmem:[%s1464_s4 + $0x1a8] sm:$0xff]  ;;  %v152_v21 = vld [vmem:[%s1464_s4 + $0x198] sm:$0xff]  ;;  %v914_v23 = vpack.c.bf16 %v145_v14, %v141_v13  ;;  %v946_v24 = vpack.c.bf16 %v147_v18, %v143_v17  ;;  %v149_v25 = vld [vmem:[%s1464_s4 + $0x180] sm:$0xff] }
  0x16   :  { %941 = vmatprep.subr.bf16.mxu1 %v940_v4  ;;  %v156_v22 = vld [vmem:[%s1464_s4 + $0x1b8] sm:$0xff]  ;;  %v153_v26 = vld [vmem:[%s1464_s4 + $0x1a0] sm:$0xff]  ;;  %v916_v27 = vpack.c.bf16 %v154_v20, %v150_v19  ;;  %v151_v29 = vld [vmem:[%s1464_s4 + $0x190] sm:$0xff] }
  0x17   :  { %v948_v28 = vpack.c.bf16 %v156_v22, %v152_v21  ;;  %v155_v30 = vld [vmem:[%s1464_s4 + $0x1b0] sm:$0xff]  ;;  %v158_v31 = vld [vmem:[%s1464_s4 + $0x1c8] sm:$0xff]  ;;  %v160_v33 = vld [vmem:[%s1464_s4 + $0x1d8] sm:$0xff]  ;;  %v918_v35 = vpack.c.bf16 %v153_v26, %v149_v25 }
  0x18   :  { %911 = vmatpush1.bf16.msra.mxu0 %v910_v11  ;;  %v162_v32 = vld [vmem:[%s1464_s4 + $0x1e8] sm:$0xff]  ;;  %v164_v34 = vld [vmem:[%s1464_s4 + $0x1f8] sm:$0xff]  ;;  %v950_v36 = vpack.c.bf16 %v155_v30, %v151_v29  ;;  %v157_v37 = vld [vmem:[%s1464_s4 + $0x1c0] sm:$0xff] }
  0x19   :  { %943 = vmatpush1.bf16.msra.mxu1 %v942_v12  ;;  %913 = vmatprep.subr.bf16.mxu0 %v912_v15  ;;  %v920_v38 = vpack.c.bf16 %v162_v32, %v158_v31  ;;  %v952_v39 = vpack.c.bf16 %v164_v34, %v160_v33  ;;  %v161_v40 = vld [vmem:[%s1464_s4 + $0x1e0] sm:$0xff]  ;;  %v159_v41 = vld [vmem:[%s1464_s4 + $0x1d0] sm:$0xff] }
  0x1a   :  { %945 = vmatprep.subr.bf16.mxu1 %v944_v16  ;;  %v163_v42 = vld [vmem:[%s1464_s4 + $0x1f0] sm:$0xff]  ;;  %v922_v43 = vpack.c.bf16 %v161_v40, %v157_v37  ;;  %v458_v58 = vld [vmem:[%s1465_s3] sm:$0xff] }
  0x1b   :  { %v954_v44 = vpack.c.bf16 %v163_v42, %v159_v41  ;;  %v1337_v59 = vadd.s32 1, %v458_v58 }
  0x1c   :  { %915 = vmatpush1.bf16.msra.mxu0 %v914_v23 }
  0x1d   :  { %947 = vmatpush1.bf16.msra.mxu1 %v946_v24  ;;  %917 = vmatprep.subr.bf16.mxu0 %v916_v27 }
  0x1e   :  { %949 = vmatprep.subr.bf16.mxu1 %v948_v28 }
  0x20   :  { %919 = vmatpush1.bf16.msra.mxu0 %v918_v35 }
  0x21   :  { %951 = vmatpush1.bf16.msra.mxu1 %v950_v36  ;;  %921 = vmatprep.subr.bf16.mxu0 %v920_v38 }
  0x22   :  { %953 = vmatprep.subr.bf16.mxu1 %v952_v39 }
  0x24   :  { %923 = vmatpush1.bf16.msra.mxu0 %v922_v43 }
  0x25   :  { %955 = vmatpush1.bf16.msra.mxu1 %v954_v44 }
  0x81   :  { %v43_v47 = vpop.permute.xlu0 %42  ;;  %v49_v50 = vpop.permute.xlu1 %48 }
  0x82   :  { %vm71_vm0 = vcmp.eq.s32.totalorder %v43_v47, %v30_v46  ;;  %vm73_vm2 = vcmp.eq.s32.totalorder %v49_v50, %v30_v46 }
  0x83   :  { %831 = vmatmul.mubr.msk.f32.vlgmr.msra.gmra.mrb[0].mxu0 %vm71_vm0, %v1045_v48  ;;  %841 = vmatmul.mubr.msk.f32.vlgmr.msra.gmra.mrb[0].mxu1 %vm71_vm0, %v1045_v48 }
  0x84   :  { %235 = vmatprep.mubr.f32.mxu0 %v1044_v3  ;;  %360 = vmatprep.mubr.f32.mxu1 %v1044_v3 }
  0x85   :  { %v46_v49 = vpop.permute.xlu0 %45  ;;  %v52_v51 = vpop.permute.xlu1 %51 }
  0x86   :  { %vm72_vm1 = vcmp.eq.s32.totalorder %v46_v49, %v30_v46  ;;  %vm74_vm3 = vcmp.eq.s32.totalorder %v52_v51, %v30_v46 }
  0x87   :  { %832 = vmatmul.mubr.msk.f32.gmra.mrb[2].mxu0 %vm72_vm1, %v1045_v48  ;;  %842 = vmatmul.mubr.msk.f32.gmra.mrb[2].mxu1 %vm72_vm1, %v1045_v48 }
  0x88   :  { %241 = vmatprep.mubr.f32.mxu0 %v1044_v3  ;;  %366 = vmatprep.mubr.f32.mxu1 %v1044_v3 }
  0x89   :  { %v55_v52 = vpop.permute.xlu0 %54  ;;  %v58_v53 = vpop.permute.xlu1 %57 }
  0x8a   :  { %vm75_vm4 = vcmp.eq.s32.totalorder %v55_v52, %v30_v46  ;;  %vm76_vm5 = vcmp.eq.s32.totalorder %v58_v53, %v30_v46 }
  0x8b   :  { %833 = vmatmul.mubr.msk.f32.gmra.mrb[4].mxu0 %vm73_vm2, %v1045_v48  ;;  %843 = vmatmul.mubr.msk.f32.gmra.mrb[4].mxu1 %vm73_vm2, %v1045_v48 }
  0x8c   :  { %247 = vmatprep.mubr.f32.mxu0 %v1044_v3  ;;  %372 = vmatprep.mubr.f32.mxu1 %v1044_v3 }
  0x8d   :  { %v61_v54 = vpop.permute.xlu0 %60  ;;  %v64_v55 = vpop.permute.xlu1 %63 }
  0x8e   :  { %vm77_vm6 = vcmp.eq.s32.totalorder %v61_v54, %v30_v46  ;;  %vm78_vm7 = vcmp.eq.s32.totalorder %v64_v55, %v30_v46 }
  0x8f   :  { %834 = vmatmul.mubr.msk.f32.gmra.mrb[6].mxu0 %vm74_vm3, %v1045_v48  ;;  %844 = vmatmul.mubr.msk.f32.gmra.mrb[6].mxu1 %vm74_vm3, %v1045_v48 }
  0x90   :  { %253 = vmatprep.mubr.f32.mxu0 %v1044_v3  ;;  %378 = vmatprep.mubr.f32.mxu1 %v1044_v3 }
  0x91   :  { %v67_v56 = vpop.permute.xlu0 %66  ;;  %v70_v57 = vpop.permute.xlu1 %69 }
  0x92   :  { %vm79_vm8 = vcmp.eq.s32.totalorder %v67_v56, %v30_v46  ;;  %vm80_vm9 = vcmp.eq.s32.totalorder %v70_v57, %v30_v46 }
  0x93   :  { %835 = vmatmul.mubr.msk.f32.gmra.mrb[8].mxu0 %vm75_vm4, %v1045_v48  ;;  %845 = vmatmul.mubr.msk.f32.gmra.mrb[8].mxu1 %vm75_vm4, %v1045_v48 }
  0x94   :  { %259 = vmatprep.mubr.f32.mxu0 %v1044_v3  ;;  %384 = vmatprep.mubr.f32.mxu1 %v1044_v3 }
  0x97   :  { %836 = vmatmul.mubr.msk.f32.gmra.mrb[10].mxu0 %vm76_vm5, %v1045_v48  ;;  %846 = vmatmul.mubr.msk.f32.gmra.mrb[10].mxu1 %vm76_vm5, %v1045_v48 }
  0x98   :  { %265 = vmatprep.mubr.f32.mxu0 %v1044_v3  ;;  %390 = vmatprep.mubr.f32.mxu1 %v1044_v3 }
  0x9b   :  { %837 = vmatmul.mubr.msk.f32.gmra.mrb[12].mxu0 %vm77_vm6, %v1045_v48  ;;  %847 = vmatmul.mubr.msk.f32.gmra.mrb[12].mxu1 %vm77_vm6, %v1045_v48 }
  0x9c   :  { %271 = vmatprep.mubr.f32.mxu0 %v1044_v3  ;;  %396 = vmatprep.mubr.f32.mxu1 %v1044_v3 }
  0x9f   :  { %838 = vmatmul.mubr.msk.f32.gmra.mrb[14].mxu0 %vm78_vm7, %v1045_v48  ;;  %848 = vmatmul.mubr.msk.f32.gmra.mrb[14].mxu1 %vm78_vm7, %v1045_v48 }
  0xa0   :  { %277 = vmatprep.mubr.f32.mxu0 %v1044_v3  ;;  %402 = vmatprep.mubr.f32.mxu1 %v1044_v3 }
  0xa3   :  { %839 = vmatmul.mubr.msk.f32.gmra.mrb[16].mxu0 %vm79_vm8, %v1045_v48  ;;  %849 = vmatmul.mubr.msk.f32.gmra.mrb[16].mxu1 %vm79_vm8, %v1045_v48 }
  0xa4   :  { %283 = vmatprep.mubr.f32.mxu0 %v1044_v3  ;;  %408 = vmatprep.mubr.f32.mxu1 %v1044_v3 }
  0xa7   :  { %840 = vmatmul.mubr.msk.f32.gmra.mrb[18].mxu0 %vm80_vm9, %v1045_v48  ;;  %850 = vmatmul.mubr.msk.f32.gmra.mrb[18].mxu1 %vm80_vm9, %v1045_v48 }
 0x156   :  { %v231_v60 = vpop.f32.mrb[0].mxu0  ;;  %v356_v61 = vpop.f32.mrb[0].mxu1 }
 0x157   :  { %415 = vst [vmem:[#allocation2] sm:$0xff] %v231_v60  ;;  %417 = vst [vmem:[#allocation2 + $0x10] sm:$0xff] %v356_v61  ;;  %v233_v62 = vpop.f32.mrb[1].mxu0  ;;  %v358_v63 = vpop.f32.mrb[1].mxu1 }
 0x158   :  { %416 = vst [vmem:[#allocation2 + $0x8] sm:$0xff] %v233_v62  ;;  %418 = vst [vmem:[#allocation2 + $0x18] sm:$0xff] %v358_v63 }
 0x15a   :  { %v237_v0 = vpop.f32.mrb[2].mxu0  ;;  %v362_v1 = vpop.f32.mrb[2].mxu1 }
 0x15b   :  { %419 = vst [vmem:[#allocation2 + $0x20] sm:$0xff] %v237_v0  ;;  %421 = vst [vmem:[#allocation2 + $0x30] sm:$0xff] %v362_v1  ;;  %v239_v3 = vpop.f32.mrb[3].mxu0  ;;  %v364_v2 = vpop.f32.mrb[3].mxu1 }
 0x15c   :  { %420 = vst [vmem:[#allocation2 + $0x28] sm:$0xff] %v239_v3  ;;  %422 = vst [vmem:[#allocation2 + $0x38] sm:$0xff] %v364_v2 }
 0x15e   :  { %v243_v4 = vpop.f32.mrb[4].mxu0  ;;  %v368_v5 = vpop.f32.mrb[4].mxu1 }
 0x15f   :  { %423 = vst [vmem:[#allocation2 + $0x40] sm:$0xff] %v243_v4  ;;  %425 = vst [vmem:[#allocation2 + $0x50] sm:$0xff] %v368_v5  ;;  %v245_v6 = vpop.f32.mrb[5].mxu0  ;;  %v370_v7 = vpop.f32.mrb[5].mxu1 }
 0x160   :  { %424 = vst [vmem:[#allocation2 + $0x48] sm:$0xff] %v245_v6  ;;  %426 = vst [vmem:[#allocation2 + $0x58] sm:$0xff] %v370_v7 }
 0x162   :  { %v249_v8 = vpop.f32.mrb[6].mxu0  ;;  %v374_v9 = vpop.f32.mrb[6].mxu1 }
 0x163   :  { %427 = vst [vmem:[#allocation2 + $0x60] sm:$0xff] %v249_v8  ;;  %429 = vst [vmem:[#allocation2 + $0x70] sm:$0xff] %v374_v9  ;;  %v251_v10 = vpop.f32.mrb[7].mxu0  ;;  %v376_v11 = vpop.f32.mrb[7].mxu1 }
 0x164   :  { %428 = vst [vmem:[#allocation2 + $0x68] sm:$0xff] %v251_v10  ;;  %430 = vst [vmem:[#allocation2 + $0x78] sm:$0xff] %v376_v11 }
 0x166   :  { %v255_v12 = vpop.f32.mrb[8].mxu0  ;;  %v380_v13 = vpop.f32.mrb[8].mxu1 }
 0x167   :  { %431 = vst [vmem:[#allocation2 + $0x80] sm:$0xff] %v255_v12  ;;  %433 = vst [vmem:[#allocation2 + $0x90] sm:$0xff] %v380_v13  ;;  %v257_v14 = vpop.f32.mrb[9].mxu0  ;;  %v382_v15 = vpop.f32.mrb[9].mxu1 }
 0x168   :  { %432 = vst [vmem:[#allocation2 + $0x88] sm:$0xff] %v257_v14  ;;  %434 = vst [vmem:[#allocation2 + $0x98] sm:$0xff] %v382_v15 }
 0x16a   :  { %v261_v16 = vpop.f32.mrb[10].mxu0  ;;  %v386_v17 = vpop.f32.mrb[10].mxu1 }
 0x16b   :  { %435 = vst [vmem:[#allocation2 + $0xa0] sm:$0xff] %v261_v16  ;;  %437 = vst [vmem:[#allocation2 + $0xb0] sm:$0xff] %v386_v17  ;;  %v263_v18 = vpop.f32.mrb[11].mxu0  ;;  %v388_v19 = vpop.f32.mrb[11].mxu1 }
 0x16c   :  { %436 = vst [vmem:[#allocation2 + $0xa8] sm:$0xff] %v263_v18  ;;  %438 = vst [vmem:[#allocation2 + $0xb8] sm:$0xff] %v388_v19 }
 0x16e   :  { %v267_v20 = vpop.f32.mrb[12].mxu0  ;;  %v392_v21 = vpop.f32.mrb[12].mxu1 }
 0x16f   :  { %439 = vst [vmem:[#allocation2 + $0xc0] sm:$0xff] %v267_v20  ;;  %441 = vst [vmem:[#allocation2 + $0xd0] sm:$0xff] %v392_v21  ;;  %v269_v22 = vpop.f32.mrb[13].mxu0  ;;  %v394_v23 = vpop.f32.mrb[13].mxu1 }
 0x170   :  { %440 = vst [vmem:[#allocation2 + $0xc8] sm:$0xff] %v269_v22  ;;  %442 = vst [vmem:[#allocation2 + $0xd8] sm:$0xff] %v394_v23 }
 0x172   :  { %v273_v24 = vpop.f32.mrb[14].mxu0  ;;  %v398_v25 = vpop.f32.mrb[14].mxu1 }
 0x173   :  { %443 = vst [vmem:[#allocation2 + $0xe0] sm:$0xff] %v273_v24  ;;  %445 = vst [vmem:[#allocation2 + $0xf0] sm:$0xff] %v398_v25  ;;  %v275_v26 = vpop.f32.mrb[15].mxu0  ;;  %v400_v27 = vpop.f32.mrb[15].mxu1 }
 0x174   :  { %444 = vst [vmem:[#allocation2 + $0xe8] sm:$0xff] %v275_v26  ;;  %446 = vst [vmem:[#allocation2 + $0xf8] sm:$0xff] %v400_v27 }
 0x176   :  { %v279_v28 = vpop.f32.mrb[16].mxu0  ;;  %v404_v29 = vpop.f32.mrb[16].mxu1  ;;  %818 = sbr.rel (%p851_p0) target bundleno = 676 (0x2a4), region = 50 }
 0x177   :  { %447 = vst [vmem:[#allocation2 + $0x100] sm:$0xff] %v279_v28  ;;  %449 = vst [vmem:[#allocation2 + $0x110] sm:$0xff] %v404_v29  ;;  %v281_v30 = vpop.f32.mrb[17].mxu0  ;;  %v406_v31 = vpop.f32.mrb[17].mxu1 }
 0x178   :  { %448 = vst [vmem:[#allocation2 + $0x108] sm:$0xff] %v281_v30  ;;  %450 = vst [vmem:[#allocation2 + $0x118] sm:$0xff] %v406_v31 }
 0x17a   :  { %v285_v32 = vpop.f32.mrb[18].mxu0  ;;  %v410_v33 = vpop.f32.mrb[18].mxu1 }
 0x17b   :  { %451 = vst [vmem:[#allocation2 + $0x120] sm:$0xff] %v285_v32  ;;  %453 = vst [vmem:[#allocation2 + $0x130] sm:$0xff] %v410_v33  ;;  %v287_v34 = vpop.f32.mrb[19].mxu0  ;;  %v412_v35 = vpop.f32.mrb[19].mxu1 }
 0x17c   :  { %452 = vst [vmem:[#allocation2 + $0x128] sm:$0xff] %v287_v34  ;;  %454 = vst [vmem:[#allocation2 + $0x138] sm:$0xff] %v412_v35 }
 0x17d LB: > { %v971_v36 = vld [vmem:[%s1461_s5 + $0x4] ss:$16 sps:$4 sm:$0xff]   ;;  %v973_v37 = vld [vmem:[%s1461_s5] ss:$16 sps:$4 sm:$0xff]   ;;  %v1046_v38 = vmov 0   ;;  %v784_v40 = vstv %s1041_s29  ;;  %s852_s17 = sshll.u32 %s1041_s29, 3  ;;  %s1041_s29 = sphi %s1342_s29, %s464_s29  }
 0x17e   : > { %702 = vmatprep.mubr.bf16.mxu0 %v1046_v38  ;;  %743 = vmatprep.mubr.bf16.mxu1 %v1046_v38  ;;  %v974_v39 = vld [vmem:[%s1461_s5 + $0x24] ss:$16 sps:$4 sm:$0xff]   ;;  %v976_v41 = vld [vmem:[%s1461_s5 + $0x20] ss:$16 sps:$4 sm:$0xff]   ;;  %vm785_vm10 = vcmp.eq.s32.totalorder %v1337_v59, %v784_v40  ;;  %v982_v44 = vld [vmem:[%s1461_s5 + $0xc] ss:$16 sps:$4 sm:$0xff]  }
 0x17f   : > { %670 = vmatprep.subr.bf16.mxu0 %v971_v36  ;;  %970 = vset.pattern.permute.xlu0 %v1046_v38  ;;  %v977_v42 = vld [vmem:[%s1461_s5 + $0x44] ss:$16 sps:$4 sm:$0xff]   ;;  %v787_v43 = vsel %vm785_vm10, 1, %v1046_v38  ;;  %v985_v45 = vld [vmem:[%s1461_s5 + $0x8] ss:$16 sps:$4 sm:$0xff]   ;;  %s468_s18 = sshra.s32 %s852_s17, 3 }
 0x180   : > { %671 = vmatpush1.bf16.msra.mxu0 %v973_v37  ;;  %789 = vperm.xlu0 %970, %v787_v43   ;;  %v979_v46 = vld [vmem:[%s1461_s5 + $0x40] ss:$16 sps:$4 sm:$0xff]   ;;  %v980_v47 = vld [vmem:[%s1461_s5 + $0x64] ss:$16 sps:$4 sm:$0xff]   ;;  %v988_v48 = vld [vmem:[%s1461_s5 + $0x2c] ss:$16 sps:$4 sm:$0xff]  }
 0x181   : > { %672 = vmatprep.subr.bf16.mxu0 %v974_v39  ;;  %711 = vmatprep.subr.bf16.mxu1 %v982_v44  ;;  %v991_v49 = vld [vmem:[%s1461_s5 + $0x28] ss:$16 sps:$4 sm:$0xff]   ;;  %v984_v50 = vld [vmem:[%s1461_s5 + $0x60] ss:$16 sps:$4 sm:$0xff]   ;;  %v986_v51 = vld [vmem:[%s1461_s5 + $0x84] ss:$16 sps:$4 sm:$0xff]  }
 0x182   : > { %712 = vmatpush1.bf16.msra.mxu1 %v985_v45  ;;  %v994_v52 = vld [vmem:[%s1461_s5 + $0x4c] ss:$16 sps:$4 sm:$0xff]   ;;  %v997_v53 = vld [vmem:[%s1461_s5 + $0x48] ss:$16 sps:$4 sm:$0xff]   ;;  %v990_v55 = vld [vmem:[%s1461_s5 + $0x80] ss:$16 sps:$4 sm:$0xff]  }
 0x183   : > { %713 = vmatprep.subr.bf16.mxu1 %v988_v48  ;;  %v1000_v54 = vld [vmem:[%s1461_s5 + $0x6c] ss:$16 sps:$4 sm:$0xff]   ;;  %v992_v56 = vld [vmem:[%s1461_s5 + $0xa4] ss:$16 sps:$4 sm:$0xff]   ;;  %v1003_v57 = vld [vmem:[%s1461_s5 + $0x68] ss:$16 sps:$4 sm:$0xff]  }
 0x184   : > { %673 = vmatpush1.bf16.msra.mxu0 %v976_v41  ;;  %v1006_v58 = vld [vmem:[%s1461_s5 + $0x8c] ss:$16 sps:$4 sm:$0xff]   ;;  %v996_v60 = vld [vmem:[%s1461_s5 + $0xa0] ss:$16 sps:$4 sm:$0xff]   ;;  %v998_v61 = vld [vmem:[%s1461_s5 + $0xc4] ss:$16 sps:$4 sm:$0xff]  }
 0x185   : > { %674 = vmatprep.subr.bf16.mxu0 %v977_v42  ;;  %v1009_v62 = vld [vmem:[%s1461_s5 + $0x88] ss:$16 sps:$4 sm:$0xff]   ;;  %v1010_v63 = vld [vmem:[%s1461_s5 + $0xac] ss:$16 sps:$4 sm:$0xff]   ;;  %v1002_v0 = vld [vmem:[%s1461_s5 + $0xc0] ss:$16 sps:$4 sm:$0xff]  }
 0x186   : > { %714 = vmatpush1.bf16.msra.mxu1 %v991_v49  ;;  %v1004_v1 = vld [vmem:[%s1461_s5 + $0xe4] ss:$16 sps:$4 sm:$0xff]   ;;  %v1012_v3 = vld [vmem:[%s1461_s5 + $0xa8] ss:$16 sps:$4 sm:$0xff]   ;;  %v1013_v2 = vld [vmem:[%s1461_s5 + $0xcc] ss:$16 sps:$4 sm:$0xff]  }
 0x187   : > { %715 = vmatprep.subr.bf16.mxu1 %v994_v52  ;;  %v1008_v4 = vld [vmem:[%s1461_s5 + $0xe0] ss:$16 sps:$4 sm:$0xff]   ;;  %v1015_v5 = vld [vmem:[%s1461_s5 + $0xc8] ss:$16 sps:$4 sm:$0xff]   ;;  %v1016_v6 = vld [vmem:[%s1461_s5 + $0xec] ss:$16 sps:$4 sm:$0xff]  }
 0x188   : > { %675 = vmatpush1.bf16.msra.mxu0 %v979_v46  ;;  %v477_v7 = vld [vmem:[#allocation3] sm:$0xf]  ;;  %v1018_v8 = vld [vmem:[%s1461_s5 + $0xe8] ss:$16 sps:$4 sm:$0xff]   ;;  %s891_s19 = sshll.u32 %s468_s18, 5  ;;  %v786_v44 = vld [vmem:[#allocation5] sm:$0xff] }
 0x189   : > { %676 = vmatprep.subr.bf16.mxu0 %v980_v47  ;;  %s472_s20 = scalar_lea.vmem [#allocation2], %s891_s19  ;;  %v775_v34 = vld [vmem:[#allocation4] sm:$0xff]  ;;  %s464_s29 = sadd.s32 1, %s1041_s29  }
 0x18a   : > { %716 = vmatpush1.bf16.msra.mxu1 %v997_v53  ;;  %v473_v9 = vld [vmem:[%s472_s20] sm:$0xff]  ;;  %v474_v10 = vld [vmem:[%s472_s20 + $0x8] sm:$0xff]  ;;  %v475_v18 = vld [vmem:[%s472_s20 + $0x10] sm:$0xff]  ;;  %p463_p1 = scmp.ge.s32.totalorder %s464_s29, %s1459_s0 }
 0x18b   : > { %717 = vmatprep.subr.bf16.mxu1 %v1000_v54  ;;  %v476_v20 = vld [vmem:[%s472_s20 + $0x18] sm:$0xff] }
 0x18c   : > { %677 = vmatpush1.bf16.msra.mxu0 %v984_v50 }
 0x18d   : > { %678 = vmatprep.subr.bf16.mxu0 %v986_v51 }
 0x18e   : > { %718 = vmatpush1.bf16.msra.mxu1 %v1003_v57 }
 0x18f   : > { %719 = vmatprep.subr.bf16.mxu1 %v1006_v58 }
 0x190   : > { %679 = vmatpush1.bf16.msra.mxu0 %v990_v55 }
 0x191   : > { %680 = vmatprep.subr.bf16.mxu0 %v992_v56 }
 0x192   : > { %720 = vmatpush1.bf16.msra.mxu1 %v1009_v62 }
 0x193   : > { %721 = vmatprep.subr.bf16.mxu1 %v1010_v63 }
 0x194   : > { %681 = vmatpush1.bf16.msra.mxu0 %v996_v60 }
 0x195   : > { %682 = vmatprep.subr.bf16.mxu0 %v998_v61 }
 0x196   : > { %722 = vmatpush1.bf16.msra.mxu1 %v1012_v3 }
 0x197   : > { %723 = vmatprep.subr.bf16.mxu1 %v1013_v2 }
 0x198   : > { %683 = vmatpush1.bf16.msra.mxu0 %v1002_v0 }
 0x199   : > { %684 = vmatprep.subr.bf16.mxu0 %v1004_v1 }
 0x19a   : > { %724 = vmatpush1.bf16.msra.mxu1 %v1015_v5 }
 0x19b   : > { %725 = vmatprep.subr.bf16.mxu1 %v1016_v6 }
 0x19c   : > { %685 = vmatpush1.bf16.msra.mxu0 %v1008_v4 }
 0x19e   : > { %726 = vmatpush1.bf16.msra.mxu1 %v1018_v8 }
 0x19f   : > { %703 = vmatmul.mubr.bf16.vlgmr.msra.gmra.mrb[0].mxu0 %v477_v7 }
 0x1a1   : > { %744 = vmatmul.mubr.bf16.vlgmr.msra.gmra.mrb[0].mxu1 %v477_v7 }
 0x1ff   : > { %v790_v41 = vpop.permute.xlu0 %789 }
 0x200   : > { %vm791_vm11 = vcmp.eq.s32.totalorder %v790_v41, 1 }
 0x272   : > { %v704_v11 = vpop.f32.mrb[0].mxu0 }
 0x273   : > { %v752_v12 = vadd.f32 %v704_v11, %v473_v9  ;;  %v706_v13 = vpop.f32.mrb[1].mxu0 }
 0x274   : > { %v753_v14 = vadd.f32 %v706_v13, %v474_v10  ;;  %v708_v15 = vpop.f32.mrb[2].mxu0  ;;  %v745_v21 = vpop.f32.mrb[0].mxu1 }
 0x275   : > { %v887_v16 = vmul.f32 -1.442695, %v752_v12  ;;  %v709_v17 = vpop.f32.mrb[3].mxu0  ;;  %v754_v22 = vadd.f32 %v745_v21, %v475_v18  ;;  %v747_v23 = vpop.f32.mrb[1].mxu1 }
 0x276   : > { %v888_v19 = vmul.f32 -1.442695, %v753_v14  ;;  %v755_v24 = vadd.f32 %v747_v23, %v476_v20  ;;  %v749_v25 = vpop.f32.mrb[2].mxu1 }
 0x277   : > { %1019 = vpow2.f32 %v887_v16  ;;  %v750_v26 = vpop.f32.mrb[3].mxu1  ;;  %v889_v27 = vmul.f32 -1.442695, %v754_v22 }
 0x278   : > { %1021 = vpow2.f32 %v888_v19 }
 0x279   : > { %1023 = vpow2.f32 %v889_v27 }
 0x27a   : > { %1025 = vtanh.f32 %v755_v24 }
 0x281   : > { %v1020_v28 = vpop.eup %1019 }
 0x282   : > { %v1022_v29 = vpop.eup %1021  ;;  %v765_v30 = vadd.f32 1.0, %v1020_v28 }
 0x283   : > { %v766_v31 = vadd.f32 1.0, %v1022_v29  ;;  %v1024_v32 = vpop.eup %1023 }
 0x284   : > { %1027 = vrcp.f32 %v765_v30  ;;  %v1026_v33 = vpop.eup %1025  ;;  %v767_v36 = vadd.f32 1.0, %v1024_v32 }
 0x285   : > { %1029 = vrcp.f32 %v766_v31 }
 0x286   : > { %1031 = vrcp.f32 %v767_v36 }
 0x28e   : > { %v1028_v35 = vpop.eup %1027 }
 0x28f   : > { %v1030_v37 = vpop.eup %1029  ;;  %v777_v38 = vmul.f32 %v1028_v35, %v1026_v33 }
 0x290   : > { %v776_v39 = vmul.f32 %v1030_v37, %v775_v34  ;;  %v1032_v42 = vpop.eup %1031 }
 0x292   : > { %v778_v40 = vadd.f32 %v777_v38, %v776_v39 }
 0x294   : > { %1033 = vtanh.f32 %v778_v40  ;;  %781 = vst [vmem:[#allocation4] sm:$0xff] %v778_v40 }
 0x29d   :  { %466 = sbr.rel (!%p463_p1) target bundleno = 381 (0x17d), region = 56 }
 0x29e   : > { %v1034_v43 = vpop.eup %1033 }
 0x29f   : > { %v780_v45 = vmul.f32 %v1034_v43, %v1032_v42 }
 0x2a1   : > { %v782_v46 = vpack.c.bf16 %v780_v45, %v780_v45  ;;  %v792_v47 = vsel %vm791_vm11, %v780_v45, %v786_v44 }
 0x2a2   : > { %793 = vst [vmem:[#allocation5] sm:$0xff] %v792_v47 }
 0x2a3   : > { %783 = vst [vmem:[#allocation3] sm:$0xf] %v782_v46 }
 0x2a4 PF:  { %v890_v49 = vld [vmem:[%s1462_s6] ss:$0 sm:$0xff]  ;;  %s805_s25 = sld [smem:[#allocation7]]  ;;  %vm808_vm12 = vcmask 7168  }
 0x2a9   :  { %v794_v48 = vld [vmem:[#allocation5] sm:$0xff] }
 0x2aa   :  { %v802_v50 = vmul.f32 %v890_v49, %v794_v48  ;;  %v806_v51 = vstv %s805_s25 }
 0x2ac   :  { %803 = vadd.xlane.f32.xlu0 %v802_v50 }
 0x339   :  { %v804_v52 = vpop.xlane.xlu0 %803 }
 0x33a   :  { %v807_v53 = vadd.f32 %v806_v51, %v804_v52 }
 0x33c   :  { %809 = vst.msk [vmem:[%s1463_s7] sm:$0xff] %vm808_vm12, %v807_v53 }

</bundles_post_ra>
